<compile_context>
chip_gen: v6e
topology: v6e:2x2x1
jax: 0.10.0
libtpu: 0.0.40
codegen_flags: <defaults>
</compile_context>

<pallas_src>
import functools

import numpy as np
import jax
import jax.numpy as jnp
from jax.experimental import pallas as pl
from jax.experimental.pallas import tpu as pltpu

WIN_SIZE = 7
WIN_SIGMA = 0.03          # matches the reference call: win_sigma=0.03
DATA_RANGE = 1.0
K1, K2 = 0.01, 0.03
SSIM_W, L1_W, EDGE_W = 0.3, 0.4, 0.3   # ssim / l1 / edge loss weights


def _gaussian_window(size=WIN_SIZE, sigma=WIN_SIGMA):
    # pytorch_msssim._fspecial_gauss_1d, computed host-side (static floats).
    coords = np.arange(size, dtype=np.float32) - size // 2
    g = np.exp(-(coords ** 2) / (2.0 * np.float32(sigma) ** 2)).astype(np.float32)
    return g / g.sum()


def _build_filter_mats(H, W):
    """Small dense per-image 'valid' correlation matrices (MXU operands)."""
    win = _gaussian_window()
    Ho = H - WIN_SIZE + 1
    Wo = W - WIN_SIZE + 1
    A_H = np.zeros((Ho, H), np.float32)        # left-multiply: filter along rows (H)
    for i in range(Ho):
        A_H[i, i:i + WIN_SIZE] = win
    A_W = np.zeros((W, Wo), np.float32)        # right-multiply: filter along lanes (W)
    for j in range(Wo):
        A_W[j:j + WIN_SIZE, j] = win
    return jnp.asarray(A_H), jnp.asarray(A_W)


def ssim_loss_kernel(t_ref, p_ref, ah_ref, aw_ref, out_ref, acc_ref, *, N, C, H, W):
    f32 = jnp.float32
    Ho = H - WIN_SIZE + 1
    Wo = W - WIN_SIZE + 1
    n_i, c_i = pl.program_id(0), pl.program_id(1)

    @pl.when(jnp.logical_and(n_i == 0, c_i == 0))
    def _init():
        acc_ref[...] = jnp.zeros_like(acc_ref)

    t = t_ref[...]      # (H, W) target image
    p = p_ref[...]      # (H, W) pred image
    ah = ah_ref[...]    # (Ho, H)
    aw = aw_ref[...]    # (W, Wo)

    # ---------------- SSIM: five separable 'valid' Gaussian filters on the MXU ----
    # TODO(synk): on v6e cast the dot operands to bf16 (keep f32 accumulation) for
    # ~2x MXU rate at realistic sizes; re-validate sigma = E[x^2]-mu^2 tolerance.
    def gfilter(x):
        yh = jnp.dot(ah, x, preferred_element_type=f32)      # (Ho, W)
        return jnp.dot(yh, aw, preferred_element_type=f32)   # (Ho, Wo)

    mu1, mu2 = gfilter(t), gfilter(p)                  # ssim(X=target, Y=pred)
    e_tt, e_pp, e_tp = gfilter(t * t), gfilter(p * p), gfilter(t * p)

    C1 = (K1 * DATA_RANGE) ** 2
    C2 = (K2 * DATA_RANGE) ** 2
    mu1_sq, mu2_sq, mu1_mu2 = mu1 * mu1, mu2 * mu2, mu1 * mu2
    sigma1_sq = e_tt - mu1_sq
    sigma2_sq = e_pp - mu2_sq
    sigma12 = e_tp - mu1_mu2
    cs_map = (2.0 * sigma12 + C2) / (sigma1_sq + sigma2_sq + C2)
    ssim_map = ((2.0 * mu1_mu2 + C1) / (mu1_sq + mu2_sq + C1)) * cs_map   # (Ho, Wo)

    # ---------------- image gradients (zero-padded last row / col) ----------------
    # dy: sublane-direction diff (cheap, only H-1 valid rows kept).
    abs_dy_t = jnp.abs(t[1:, :] - t[:-1, :])
    abs_dy_p = jnp.abs(p[1:, :] - p[:-1, :])
    # dx: XLU lane roll (shift W-1 == jnp.roll shift=-1) + mask of the wrap column;
    # replaces v2's block-diagonal difference matmul and its dominant DMA constant.
    col = jax.lax.broadcasted_iota(jnp.int32, (H, W), 1)
    x_valid = (col < (W - 1)).astype(f32)
    abs_dx_t = jnp.abs(pltpu.roll(t, W - 1, axis=1) - t) * x_valid
    abs_dx_p = jnp.abs(pltpu.roll(p, W - 1, axis=1) - p) * x_valid

    # ---------------- masked L1: self.l1(target, pred) masks on pred > 0 ----------
    mask = (p > 0.0).astype(f32)
    abs_diff_m = jnp.abs(p - t) * mask

    # ---------------- fused partial reduction --------------------------------------
    # Sublane partials only per step; stack as rows of one (8, W) block and
    # accumulate into a single VMEM vreg across the grid.
    def rowsum(x):
        return jnp.sum(x, axis=0, keepdims=True)   # (1, width)

    ssim_row = jnp.concatenate(
        [rowsum(ssim_map), jnp.zeros((1, W - Wo), f32)], axis=1)       # pad Wo -> W
    acc_ref[...] += jnp.concatenate(
        [rowsum(abs_dy_t), rowsum(abs_dy_p),
         rowsum(abs_dx_t), rowsum(abs_dx_p),
         rowsum(abs_diff_m), rowsum(mask),
         ssim_row, jnp.zeros((1, W), f32)], axis=0)                    # (8, W)

    # ---------------- finalize: one lane collapse + scalar math, last step only ----
    @pl.when(jnp.logical_and(n_i == pl.num_programs(0) - 1,
                             c_i == pl.num_programs(1) - 1))
    def _finalize():
        tot = jnp.sum(acc_ref[...], axis=1, keepdims=True)   # (8, 1) single collapse

        def sc(k):
            return jnp.sum(tot[k:k + 1, :])                  # scalar extract

        sum_dy_t, sum_dy_p = sc(0), sc(1)
        sum_dx_t, sum_dx_p = sc(2), sc(3)
        sum_l1, sum_mask = sc(4), sc(5)
        sum_ssim = sc(6)

        inv_full = 1.0 / float(N * C * H * W)     # zero-padded grads => full-size mean
        weights_x = jnp.exp(sum_dx_t * inv_full)
        weights_y = jnp.exp(sum_dy_t * inv_full)
        depth_smoothness = (sum_dx_p * inv_full) * weights_x \
                         + (sum_dy_p * inv_full) * weights_y
        ssim_loss = 1.0 - sum_ssim / float(N * C * Ho * Wo)
        l1_loss = sum_l1 / sum_mask               # NaN on empty mask, like the torch ref
        out_ref[0, 0] = EDGE_W * depth_smoothness + SSIM_W * ssim_loss + L1_W * l1_loss


@jax.jit
def ssim_total_loss(pred, target):
    N, C, H, W = pred.shape
    Ho = H - WIN_SIZE + 1
    Wo = W - WIN_SIZE + 1
    A_H, A_W = _build_filter_mats(H, W)

    # NCHW consumed directly: (1,1,H,W) image blocks, batch dims squeezed — no
    # wrapper-side transpose / reshape (review item 3).
    img_spec = pl.BlockSpec((None, None, H, W), lambda n, c: (n, c, 0, 0))
    kernel = functools.partial(ssim_loss_kernel, N=N, C=C, H=H, W=W)

    out = pl.pallas_call(
        kernel,
        out_shape=jax.ShapeDtypeStruct((1, 1), jnp.float32),
        grid=(N, C),
        in_specs=[img_spec, img_spec,
                  pl.BlockSpec((Ho, H), lambda n, c: (0, 0)),
                  pl.BlockSpec((W, Wo), lambda n, c: (0, 0))],
        out_specs=pl.BlockSpec(memory_space=pltpu.MemorySpace.SMEM),
        scratch_shapes=[pltpu.VMEM((8, W), jnp.float32)],
        compiler_params=pltpu.CompilerParams(
            # Single reduction axis pair: "arbitrary" (scalar accumulation across it).
            dimension_semantics=("arbitrary", "arbitrary"),
            vmem_limit_bytes=32 * 1024 * 1024),   # explicit for v5e's smaller default
    )(target.astype(jnp.float32), pred.astype(jnp.float32), A_H, A_W)
    return out[0, 0]


if __name__ == "__main__":
    key = jax.random.PRNGKey(0)
    kp, kt = jax.random.split(key)
    shape = (2, 4, 16, 16)  # N, C, H, W  (H, W > win_size = 7)
    # depth-map-like inputs in (0, 1) so data_range=1.0 and mask>0 are meaningful
    pred = jax.random.uniform(kp, shape, dtype=jnp.float32, minval=0.01, maxval=1.0)
    target = jax.random.uniform(kt, shape, dtype=jnp.float32, minval=0.01, maxval=1.0)

    loss = ssim_total_loss(pred, target)
    jax.block_until_ready(loss)
    print("KERNEL_OK")
</pallas_src>

<mosaic_0001>
module attributes {stable_mosaic.version = 11 : i64} {
  func.func @ssim_loss_kernel(%arg0: i32, %arg1: i32, %arg2: memref<1x1x16x16xf32, #tpu.memory_space<vmem>>, %arg3: memref<1x1x16x16xf32, #tpu.memory_space<vmem>>, %arg4: memref<10x16xf32, #tpu.memory_space<vmem>>, %arg5: memref<16x10xf32, #tpu.memory_space<vmem>>, %arg6: memref<1x1xf32, #tpu.memory_space<smem>>, %arg7: memref<8x16xf32, #tpu.memory_space<vmem>>) attributes {dimension_semantics = [#tpu.dimension_semantics<arbitrary>, #tpu.dimension_semantics<arbitrary>], iteration_bounds = array<i64: 2, 4>, scalar_prefetch = 0 : i64, scratch_operands = 1 : i64, tpu.core_type = #tpu.core_type<tc>, window_params = [{transform_indices = @transform_0, window_bounds = array<i64: 1, 1, 16, 16>}, {transform_indices = @transform_1, window_bounds = array<i64: 1, 1, 16, 16>}, {pipeline_mode = #tpu.pipeline_mode<synchronous>, transform_indices = @transform_2, window_bounds = array<i64: 10, 16>}, {pipeline_mode = #tpu.pipeline_mode<synchronous>, transform_indices = @transform_3, window_bounds = array<i64: 16, 10>}, {transform_indices = @transform_4, window_bounds = array<i64: 1, 1>}]} {
    %c0_i32 = arith.constant 0 : i32
    %0 = arith.cmpi eq, %arg0, %c0_i32 : i32
    %c0_i32_0 = arith.constant 0 : i32
    %1 = arith.cmpi eq, %arg1, %c0_i32_0 : i32
    %2 = arith.andi %0, %1 : i1
    %3 = arith.extui %2 : i1 to i32
    %c0_i32_1 = arith.constant 0 : i32
    %4 = arith.cmpi ne, %3, %c0_i32_1 : i32
    scf.if %4 {
      %cst_45 = arith.constant 0.000000e+00 : f32
      %101 = vector.broadcast %cst_45 : f32 to vector<8x16xf32>
      %c0_46 = arith.constant 0 : index
      %c0_47 = arith.constant 0 : index
      %102 = vector.load %arg7[%c0_46, %c0_47] : memref<8x16xf32, #tpu.memory_space<vmem>>, vector<8x16xf32>
      tpu.vector_store %arg7[%c0_46, %c0_47], %101 {strides = array<i32>} : memref<8x16xf32, #tpu.memory_space<vmem>>, vector<8x16xf32>,
    } else {
    }
    %c0 = arith.constant 0 : index
    %c0_2 = arith.constant 0 : index
    %c0_3 = arith.constant 0 : index
    %c0_4 = arith.constant 0 : index
    %5 = vector.load %arg2[%c0, %c0_2, %c0_3, %c0_4] : memref<1x1x16x16xf32, #tpu.memory_space<vmem>>, vector<1x1x16x16xf32>
    %6 = vector.shape_cast %5 : vector<1x1x16x16xf32> to vector<16x16xf32>
    %c0_5 = arith.constant 0 : index
    %c0_6 = arith.constant 0 : index
    %c0_7 = arith.constant 0 : index
    %c0_8 = arith.constant 0 : index
    %7 = vector.load %arg3[%c0_5, %c0_6, %c0_7, %c0_8] : memref<1x1x16x16xf32, #tpu.memory_space<vmem>>, vector<1x1x16x16xf32>
    %8 = vector.shape_cast %7 : vector<1x1x16x16xf32> to vector<16x16xf32>
    %c0_9 = arith.constant 0 : index
    %c0_10 = arith.constant 0 : index
    %9 = vector.load %arg4[%c0_9, %c0_10] : memref<10x16xf32, #tpu.memory_space<vmem>>, vector<10x16xf32>
    %c0_11 = arith.constant 0 : index
    %c0_12 = arith.constant 0 : index
    %10 = vector.load %arg5[%c0_11, %c0_12] : memref<16x10xf32, #tpu.memory_space<vmem>>, vector<16x10xf32>
    %cst = arith.constant dense<0.000000e+00> : vector<10x16xf32>
    %11 = tpu.matmul %9, %6, %cst {dimension_numbers = #tpu.dot_dimension_numbers<[1], [0], [0], [1], [0, 0, 1, 1], [], []>} : vector<10x16xf32>, vector<16x16xf32>, vector<10x16xf32> -> vector<10x16xf32>
    %cst_13 = arith.constant dense<0.000000e+00> : vector<10x10xf32>
    %12 = tpu.matmul %11, %10, %cst_13 {dimension_numbers = #tpu.dot_dimension_numbers<[1], [0], [0], [1], [0, 0, 1, 1], [], []>} : vector<10x16xf32>, vector<16x10xf32>, vector<10x10xf32> -> vector<10x10xf32>
    %cst_14 = arith.constant dense<0.000000e+00> : vector<10x16xf32>
    %13 = tpu.matmul %9, %8, %cst_14 {dimension_numbers = #tpu.dot_dimension_numbers<[1], [0], [0], [1], [0, 0, 1, 1], [], []>} : vector<10x16xf32>, vector<16x16xf32>, vector<10x16xf32> -> vector<10x16xf32>
    %cst_15 = arith.constant dense<0.000000e+00> : vector<10x10xf32>
    %14 = tpu.matmul %13, %10, %cst_15 {dimension_numbers = #tpu.dot_dimension_numbers<[1], [0], [0], [1], [0, 0, 1, 1], [], []>} : vector<10x16xf32>, vector<16x10xf32>, vector<10x10xf32> -> vector<10x10xf32>
    %15 = arith.mulf %6, %6 : vector<16x16xf32>
    %cst_16 = arith.constant dense<0.000000e+00> : vector<10x16xf32>
    %16 = tpu.matmul %9, %15, %cst_16 {dimension_numbers = #tpu.dot_dimension_numbers<[1], [0], [0], [1], [0, 0, 1, 1], [], []>} : vector<10x16xf32>, vector<16x16xf32>, vector<10x16xf32> -> vector<10x16xf32>
    %cst_17 = arith.constant dense<0.000000e+00> : vector<10x10xf32>
    %17 = tpu.matmul %16, %10, %cst_17 {dimension_numbers = #tpu.dot_dimension_numbers<[1], [0], [0], [1], [0, 0, 1, 1], [], []>} : vector<10x16xf32>, vector<16x10xf32>, vector<10x10xf32> -> vector<10x10xf32>
    %18 = arith.mulf %8, %8 : vector<16x16xf32>
    %cst_18 = arith.constant dense<0.000000e+00> : vector<10x16xf32>
    %19 = tpu.matmul %9, %18, %cst_18 {dimension_numbers = #tpu.dot_dimension_numbers<[1], [0], [0], [1], [0, 0, 1, 1], [], []>} : vector<10x16xf32>, vector<16x16xf32>, vector<10x16xf32> -> vector<10x16xf32>
    %cst_19 = arith.constant dense<0.000000e+00> : vector<10x10xf32>
    %20 = tpu.matmul %19, %10, %cst_19 {dimension_numbers = #tpu.dot_dimension_numbers<[1], [0], [0], [1], [0, 0, 1, 1], [], []>} : vector<10x16xf32>, vector<16x10xf32>, vector<10x10xf32> -> vector<10x10xf32>
    %21 = arith.mulf %6, %8 : vector<16x16xf32>
    %cst_20 = arith.constant dense<0.000000e+00> : vector<10x16xf32>
    %22 = tpu.matmul %9, %21, %cst_20 {dimension_numbers = #tpu.dot_dimension_numbers<[1], [0], [0], [1], [0, 0, 1, 1], [], []>} : vector<10x16xf32>, vector<16x16xf32>, vector<10x16xf32> -> vector<10x16xf32>
    %cst_21 = arith.constant dense<0.000000e+00> : vector<10x10xf32>
    %23 = tpu.matmul %22, %10, %cst_21 {dimension_numbers = #tpu.dot_dimension_numbers<[1], [0], [0], [1], [0, 0, 1, 1], [], []>} : vector<10x16xf32>, vector<16x10xf32>, vector<10x10xf32> -> vector<10x10xf32>
    %24 = arith.mulf %12, %12 : vector<10x10xf32>
    %25 = arith.mulf %14, %14 : vector<10x10xf32>
    %26 = arith.mulf %12, %14 : vector<10x10xf32>
    %27 = arith.subf %17, %24 : vector<10x10xf32>
    %28 = arith.subf %20, %25 : vector<10x10xf32>
    %29 = arith.subf %23, %26 : vector<10x10xf32>
    %cst_22 = arith.constant 2.000000e+00 : f32
    %30 = vector.broadcast %cst_22 : f32 to vector<10x10xf32>
    %31 = arith.mulf %30, %29 : vector<10x10xf32>
    %cst_23 = arith.constant 8.99999984E-4 : f32
    %32 = vector.broadcast %cst_23 : f32 to vector<10x10xf32>
    %33 = arith.addf %31, %32 : vector<10x10xf32>
    %34 = arith.addf %27, %28 : vector<10x10xf32>
    %cst_24 = arith.constant 8.99999984E-4 : f32
    %35 = vector.broadcast %cst_24 : f32 to vector<10x10xf32>
    %36 = arith.addf %34, %35 : vector<10x10xf32>
    %37 = arith.divf %33, %36 : vector<10x10xf32>
    %cst_25 = arith.constant 2.000000e+00 : f32
    %38 = vector.broadcast %cst_25 : f32 to vector<10x10xf32>
    %39 = arith.mulf %38, %26 : vector<10x10xf32>
    %cst_26 = arith.constant 9.99999974E-5 : f32
    %40 = vector.broadcast %cst_26 : f32 to vector<10x10xf32>
    %41 = arith.addf %39, %40 : vector<10x10xf32>
    %42 = arith.addf %24, %25 : vector<10x10xf32>
    %cst_27 = arith.constant 9.99999974E-5 : f32
    %43 = vector.broadcast %cst_27 : f32 to vector<10x10xf32>
    %44 = arith.addf %42, %43 : vector<10x10xf32>
    %45 = arith.divf %41, %44 : vector<10x10xf32>
    %46 = arith.mulf %45, %37 : vector<10x10xf32>
    %47 = vector.extract_strided_slice %6 {offsets = [1, 0], sizes = [15, 16], strides = [1, 1]} : vector<16x16xf32> to vector<15x16xf32>
    %48 = vector.extract_strided_slice %6 {offsets = [0, 0], sizes = [15, 16], strides = [1, 1]} : vector<16x16xf32> to vector<15x16xf32>
    %49 = arith.subf %47, %48 : vector<15x16xf32>
    %50 = math.absf %49 : vector<15x16xf32>
    %51 = vector.extract_strided_slice %8 {offsets = [1, 0], sizes = [15, 16], strides = [1, 1]} : vector<16x16xf32> to vector<15x16xf32>
    %52 = vector.extract_strided_slice %8 {offsets = [0, 0], sizes = [15, 16], strides = [1, 1]} : vector<16x16xf32> to vector<15x16xf32>
    %53 = arith.subf %51, %52 : vector<15x16xf32>
    %54 = math.absf %53 : vector<15x16xf32>
    %55 = tpu.iota {dimensions = array<i32: 1>} : vector<16x16xi32>
    %c15_i32 = arith.constant 15 : i32
    %56 = vector.broadcast %c15_i32 : i32 to vector<16x16xi32>
    %57 = arith.cmpi slt, %55, %56 : vector<16x16xi32>
    %58 = arith.extui %57 : vector<16x16xi1> to vector<16x16xi32>
    %59 = arith.sitofp %58 : vector<16x16xi32> to vector<16x16xf32>
    %c15_i32_28 = arith.constant 15 : i32
    %60 = tpu.dynamic_rotate %6 by %c15_i32_28 dim 1 : vector<16x16xf32>, i32 -> vector<16x16xf32>
    %61 = arith.subf %60, %6 : vector<16x16xf32>
    %62 = math.absf %61 : vector<16x16xf32>
    %63 = arith.mulf %62, %59 : vector<16x16xf32>
    %c15_i32_29 = arith.constant 15 : i32
    %64 = tpu.dynamic_rotate %8 by %c15_i32_29 dim 1 : vector<16x16xf32>, i32 -> vector<16x16xf32>
    %65 = arith.subf %64, %8 : vector<16x16xf32>
    %66 = math.absf %65 : vector<16x16xf32>
    %67 = arith.mulf %66, %59 : vector<16x16xf32>
    %cst_30 = arith.constant 0.000000e+00 : f32
    %68 = vector.broadcast %cst_30 : f32 to vector<16x16xf32>
    %69 = arith.cmpf ogt, %8, %68 : vector<16x16xf32>
    %70 = arith.extui %69 : vector<16x16xi1> to vector<16x16xi32>
    %71 = arith.sitofp %70 : vector<16x16xi32> to vector<16x16xf32>
    %72 = arith.subf %8, %6 : vector<16x16xf32>
    %73 = math.absf %72 : vector<16x16xf32>
    %74 = arith.mulf %73, %71 : vector<16x16xf32>
    %cst_31 = arith.constant dense<0.000000e+00> : vector<10xf32>
    %75 = vector.multi_reduction <add>, %46, %cst_31 [0] : vector<10x10xf32> to vector<10xf32>
    %76 = vector.shape_cast %75 : vector<10xf32> to vector<1x10xf32>
    %cst_32 = arith.constant 0.000000e+00 : f32
    %77 = vector.broadcast %cst_32 : f32 to vector<1x6xf32>
    %78 = tpu.concatenate %76, %77 in 1 : vector<1x10xf32>, vector<1x6xf32> -> vector<1x16xf32>
    %c0_33 = arith.constant 0 : index
    %c0_34 = arith.constant 0 : index
    %79 = vector.load %arg7[%c0_33, %c0_34] : memref<8x16xf32, #tpu.memory_space<vmem>>, vector<8x16xf32>
    %cst_35 = arith.constant dense<0.000000e+00> : vector<16xf32>
    %80 = vector.multi_reduction <add>, %50, %cst_35 [0] : vector<15x16xf32> to vector<16xf32>
    %81 = vector.shape_cast %80 : vector<16xf32> to vector<1x16xf32>
    %cst_36 = arith.constant dense<0.000000e+00> : vector<16xf32>
    %82 = vector.multi_reduction <add>, %54, %cst_36 [0] : vector<15x16xf32> to vector<16xf32>
    %83 = vector.shape_cast %82 : vector<16xf32> to vector<1x16xf32>
    %cst_37 = arith.constant dense<0.000000e+00> : vector<16xf32>
    %84 = vector.multi_reduction <add>, %63, %cst_37 [0] : vector<16x16xf32> to vector<16xf32>
    %85 = vector.shape_cast %84 : vector<16xf32> to vector<1x16xf32>
    %cst_38 = arith.constant dense<0.000000e+00> : vector<16xf32>
    %86 = vector.multi_reduction <add>, %67, %cst_38 [0] : vector<16x16xf32> to vector<16xf32>
    %87 = vector.shape_cast %86 : vector<16xf32> to vector<1x16xf32>
    %cst_39 = arith.constant dense<0.000000e+00> : vector<16xf32>
    %88 = vector.multi_reduction <add>, %74, %cst_39 [0] : vector<16x16xf32> to vector<16xf32>
    %89 = vector.shape_cast %88 : vector<16xf32> to vector<1x16xf32>
    %cst_40 = arith.constant dense<0.000000e+00> : vector<16xf32>
    %90 = vector.multi_reduction <add>, %71, %cst_40 [0] : vector<16x16xf32> to vector<16xf32>
    %91 = vector.shape_cast %90 : vector<16xf32> to vector<1x16xf32>
    %cst_41 = arith.constant 0.000000e+00 : f32
    %92 = vector.broadcast %cst_41 : f32 to vector<1x16xf32>
    %93 = tpu.concatenate %81, %83, %85, %87, %89, %91, %78, %92 in 0 : vector<1x16xf32>, vector<1x16xf32>, vector<1x16xf32>, vector<1x16xf32>, vector<1x16xf32>, vector<1x16xf32>, vector<1x16xf32>, vector<1x16xf32> -> vector<8x16xf32>
    %94 = arith.addf %79, %93 : vector<8x16xf32>
    %c0_42 = arith.constant 0 : index
    %c0_43 = arith.constant 0 : index
    %95 = vector.load %arg7[%c0_42, %c0_43] : memref<8x16xf32, #tpu.memory_space<vmem>>, vector<8x16xf32>
    tpu.vector_store %arg7[%c0_42, %c0_43], %94 {strides = array<i32>} : memref<8x16xf32, #tpu.memory_space<vmem>>, vector<8x16xf32>,
    %c1_i32 = arith.constant 1 : i32
    %96 = arith.cmpi eq, %arg0, %c1_i32 : i32
    %c3_i32 = arith.constant 3 : i32
    %97 = arith.cmpi eq, %arg1, %c3_i32 : i32
    %98 = arith.andi %96, %97 : i1
    %99 = arith.extui %98 : i1 to i32
    %c0_i32_44 = arith.constant 0 : i32
    %100 = arith.cmpi ne, %99, %c0_i32_44 : i32
    scf.if %100 {
      %c0_45 = arith.constant 0 : index
      %c0_46 = arith.constant 0 : index
      %101 = vector.load %arg7[%c0_45, %c0_46] : memref<8x16xf32, #tpu.memory_space<vmem>>, vector<8x16xf32>
      %cst_47 = arith.constant dense<0.000000e+00> : vector<8xf32>
      %102 = vector.multi_reduction <add>, %101, %cst_47 [1] : vector<8x16xf32> to vector<8xf32>
      %103 = vector.shape_cast %102 : vector<8xf32> to vector<8x1xf32>
      %104 = vector.extract_strided_slice %103 {offsets = [0, 0], sizes = [1, 1], strides = [1, 1]} : vector<8x1xf32> to vector<1x1xf32>
      %105 = vector.shape_cast %104 : vector<1x1xf32> to vector<1x1x1xf32>
      %cst_48 = arith.constant dense<0.000000e+00> : vector<1xf32>
      %106 = vector.multi_reduction <add>, %105, %cst_48 [1, 2] : vector<1x1x1xf32> to vector<1xf32>
      %107 = vector.shape_cast %106 : vector<1xf32> to vector<1x1x1xf32>
      %108 = vector.extract %107[0, 0, 0] : f32 from vector<1x1x1xf32>
      %109 = vector.extract_strided_slice %103 {offsets = [1, 0], sizes = [1, 1], strides = [1, 1]} : vector<8x1xf32> to vector<1x1xf32>
      %110 = vector.shape_cast %109 : vector<1x1xf32> to vector<1x1x1xf32>
      %cst_49 = arith.constant dense<0.000000e+00> : vector<1xf32>
      %111 = vector.multi_reduction <add>, %110, %cst_49 [1, 2] : vector<1x1x1xf32> to vector<1xf32>
      %112 = vector.shape_cast %111 : vector<1xf32> to vector<1x1x1xf32>
      %113 = vector.extract %112[0, 0, 0] : f32 from vector<1x1x1xf32>
      %114 = vector.extract_strided_slice %103 {offsets = [2, 0], sizes = [1, 1], strides = [1, 1]} : vector<8x1xf32> to vector<1x1xf32>
      %115 = vector.shape_cast %114 : vector<1x1xf32> to vector<1x1x1xf32>
      %cst_50 = arith.constant dense<0.000000e+00> : vector<1xf32>
      %116 = vector.multi_reduction <add>, %115, %cst_50 [1, 2] : vector<1x1x1xf32> to vector<1xf32>
      %117 = vector.shape_cast %116 : vector<1xf32> to vector<1x1x1xf32>
      %118 = vector.extract %117[0, 0, 0] : f32 from vector<1x1x1xf32>
      %119 = vector.extract_strided_slice %103 {offsets = [3, 0], sizes = [1, 1], strides = [1, 1]} : vector<8x1xf32> to vector<1x1xf32>
      %120 = vector.shape_cast %119 : vector<1x1xf32> to vector<1x1x1xf32>
      %cst_51 = arith.constant dense<0.000000e+00> : vector<1xf32>
      %121 = vector.multi_reduction <add>, %120, %cst_51 [1, 2] : vector<1x1x1xf32> to vector<1xf32>
      %122 = vector.shape_cast %121 : vector<1xf32> to vector<1x1x1xf32>
      %123 = vector.extract %122[0, 0, 0] : f32 from vector<1x1x1xf32>
      %124 = vector.extract_strided_slice %103 {offsets = [4, 0], sizes = [1, 1], strides = [1, 1]} : vector<8x1xf32> to vector<1x1xf32>
      %125 = vector.shape_cast %124 : vector<1x1xf32> to vector<1x1x1xf32>
      %cst_52 = arith.constant dense<0.000000e+00> : vector<1xf32>
      %126 = vector.multi_reduction <add>, %125, %cst_52 [1, 2] : vector<1x1x1xf32> to vector<1xf32>
      %127 = vector.shape_cast %126 : vector<1xf32> to vector<1x1x1xf32>
      %128 = vector.extract %127[0, 0, 0] : f32 from vector<1x1x1xf32>
      %129 = vector.extract_strided_slice %103 {offsets = [5, 0], sizes = [1, 1], strides = [1, 1]} : vector<8x1xf32> to vector<1x1xf32>
      %130 = vector.shape_cast %129 : vector<1x1xf32> to vector<1x1x1xf32>
      %cst_53 = arith.constant dense<0.000000e+00> : vector<1xf32>
      %131 = vector.multi_reduction <add>, %130, %cst_53 [1, 2] : vector<1x1x1xf32> to vector<1xf32>
      %132 = vector.shape_cast %131 : vector<1xf32> to vector<1x1x1xf32>
      %133 = vector.extract %132[0, 0, 0] : f32 from vector<1x1x1xf32>
      %134 = vector.extract_strided_slice %103 {offsets = [6, 0], sizes = [1, 1], strides = [1, 1]} : vector<8x1xf32> to vector<1x1xf32>
      %135 = vector.shape_cast %134 : vector<1x1xf32> to vector<1x1x1xf32>
      %cst_54 = arith.constant dense<0.000000e+00> : vector<1xf32>
      %136 = vector.multi_reduction <add>, %135, %cst_54 [1, 2] : vector<1x1x1xf32> to vector<1xf32>
      %137 = vector.shape_cast %136 : vector<1xf32> to vector<1x1x1xf32>
      %138 = vector.extract %137[0, 0, 0] : f32 from vector<1x1x1xf32>
      %cst_55 = arith.constant 4.8828125E-4 : f32
      %139 = arith.mulf %118, %cst_55 : f32
      %140 = math.exp %139 : f32
      %cst_56 = arith.constant 4.8828125E-4 : f32
      %141 = arith.mulf %108, %cst_56 : f32
      %142 = math.exp %141 : f32
      %cst_57 = arith.constant 4.8828125E-4 : f32
      %143 = arith.mulf %123, %cst_57 : f32
      %144 = arith.mulf %143, %140 : f32
      %cst_58 = arith.constant 4.8828125E-4 : f32
      %145 = arith.mulf %113, %cst_58 : f32
      %146 = arith.mulf %145, %142 : f32
      %147 = arith.addf %144, %146 : f32
      %cst_59 = arith.constant 8.000000e+02 : f32
      %148 = arith.divf %138, %cst_59 : f32
      %cst_60 = arith.constant 1.000000e+00 : f32
      %149 = arith.subf %cst_60, %148 : f32
      %150 = arith.divf %128, %133 : f32
      %cst_61 = arith.constant 3.000000e-01 : f32
      %151 = arith.mulf %cst_61, %147 : f32
      %cst_62 = arith.constant 3.000000e-01 : f32
      %152 = arith.mulf %cst_62, %149 : f32
      %153 = arith.addf %151, %152 : f32
      %cst_63 = arith.constant 4.000000e-01 : f32
      %154 = arith.mulf %cst_63, %150 : f32
      %155 = arith.addf %153, %154 : f32
      %c0_64 = arith.constant 0 : index
      %c0_65 = arith.constant 0 : index
      %156 = memref.load %arg6[%c0_64, %c0_65] : memref<1x1xf32, #tpu.memory_space<smem>>
      memref.store %155, %arg6[%c0_64, %c0_65] : memref<1x1xf32, #tpu.memory_space<smem>>
    } else {
    }
    return
  }
  func.func @transform_0(%arg0: i32, %arg1: i32) -> (i32, i32, i32, i32) {
    %c0_i32 = arith.constant 0 : i32
    %c0_i32_0 = arith.constant 0 : i32
    %c0_i32_1 = arith.constant 0 : i32
    return %arg0, %arg1, %c0_i32, %c0_i32_0 : i32, i32, i32, i32
  }
  func.func @transform_1(%arg0: i32, %arg1: i32) -> (i32, i32, i32, i32) {
    %c0_i32 = arith.constant 0 : i32
    %c0_i32_0 = arith.constant 0 : i32
    %c0_i32_1 = arith.constant 0 : i32
    return %arg0, %arg1, %c0_i32, %c0_i32_0 : i32, i32, i32, i32
  }
  func.func @transform_2(%arg0: i32, %arg1: i32) -> (i32, i32) {
    %c0_i32 = arith.constant 0 : i32
    %c0_i32_0 = arith.constant 0 : i32
    %c0_i32_1 = arith.constant 0 : i32
    return %c0_i32, %c0_i32_0 : i32, i32
  }
  func.func @transform_3(%arg0: i32, %arg1: i32) -> (i32, i32) {
    %c0_i32 = arith.constant 0 : i32
    %c0_i32_0 = arith.constant 0 : i32
    %c0_i32_1 = arith.constant 0 : i32
    return %c0_i32, %c0_i32_0 : i32, i32
  }
  func.func @transform_4(%arg0: i32, %arg1: i32) -> (i32, i32) {
    %c0_i32 = arith.constant 0 : i32
    %c0_i32_0 = arith.constant 0 : i32
    %c0_i32_1 = arith.constant 0 : i32
    return %c0_i32, %c0_i32_0 : i32, i32
  }
}

</mosaic_0001>

<bundles_post_ra>
// kernel: ssim_total_loss.1
= control target key start
LH: loop header
LB: loop body
LE: loop exit
PB: predicated region body
PF: predicated region fallthrough
CT: control target
= control target key end

     0   :  { %s2403_s0 = inlined_call_operand.hbm [shape: f32[2,4,16,16], index: 0, kind: input, shape index: {}]   ;;  %s2404_s1 = inlined_call_operand.hbm [shape: f32[2,4,16,16], index: 1, kind: input, shape index: {}]   ;;  %s2405_s2 = inlined_call_operand.hbm [shape: f32[10,16], index: 2, kind: input, shape index: {}]   ;;  %s2406_s3 = inlined_call_operand.hbm [shape: f32[16,10], index: 3, kind: input, shape index: {}]   ;;  %s2407_s4 = inlined_call_operand.hbm [shape: f32[1,1], index: 4, kind: output, shape index: {}]  }
   0x1   :  { %2414 = sst [smem:[#allocation19_spill]] %s2405_s2 }
   0x2   :  { %2415 = sst [smem:[#allocation20_spill]] %s2406_s3 }
   0x3   :  { %9 = vsyncpa [#allocation4], 0 }
   0x4   :  { %11 = vsyncpa [#allocation4 + $0x1], 0 }
   0x5   :  { %12 = vsyncpa [#allocation7], 0 }
   0x6   :  { %14 = vsyncpa [#allocation7 + $0x1], 0 }
   0x7   :  { %15 = vsyncpa [#allocation10], 0 }
   0x8   :  { %16 = vsyncpa [#allocation5], 0  ;;  %s2058_s15 = smov 0   ;;  %s2060_s16 = smov 0  }
   0x9   :  { %s2062_s17 = smov 0   ;;  %s2064_s18 = smov 0  }
   0xa   :  { %s2066_s19 = smov 0   ;;  %s2068_s20 = smov 0  }
   0xb   :  { %s2070_s21 = smov 0   ;;  %s2072_s22 = smov 0  }
   0xc LB: > { %2416 = sst [smem:[#allocation17_spill]] %s2011_s20  ;;  %s2097_s23 = sadd.s32 4294967295, %s2019_s22   ;;  %s2019_s22 = sphi %s2072_s22, %s22_s22   ;;  %s2015_s21 = sphi %s2070_s21, %s2434_s21   ;;  %s2011_s20 = sphi %s2068_s20, %s2429_s20   ;;  %s2007_s19 = sphi %s2066_s19, %s2433_s19   ;;  %s2003_s18 = sphi %s2064_s18, %s2428_s18   ;;  %s1999_s17 = sphi %s2062_s17, %s2432_s17   ;;  %s1995_s16 = sphi %s2060_s16, %s2431_s16   ;;  %s1991_s15 = sphi %s2058_s15, %s2430_s15  }
   0xd   : > { %p56_p0 = scmp.ne.s32.totalorder %s1995_s16, %s1991_s15  ;;  %p57_p1 = scmp.eq.s32.totalorder %s2097_s23, 0 }
   0xe   : > { %p1520_p2 = scmp.ge.s32.totalorder %s2019_s22, 1  ;;  %p158_p3 = scmp.lt.s32.totalorder %s2019_s22, 9 }
   0xf   : > { %p2105_p4 = por %p57_p1, %p56_p0  ;;  %s2021_s26 = smov [#allocation8]  }
  0x10   : > { %p2109_p5 = pnand %p1520_p2, %p158_p3  ;;  %s170_s27 = sshll.u32 %s2021_s26, 4  ;;  %s171_s27 = int_to_ptr.vmem [resolvable:$true] %s170_s27 }
  0x11   : > { %s2022_s29 = smov [#allocation9]   ;;  %s1830_s5 = scalar_lea.vmem %s171_s27, 256 }
  0x12   : > { %p1710_p6 = pneg %p2109_p5  ;;  %s183_s30 = sshll.u32 %s2022_s29, 4  ;;  %s184_s30 = int_to_ptr.vmem [resolvable:$true] %s183_s30 }
  0x13   : > { %p1831_p9 = scmp.ne.s32.totalorder %s171_s27, %s1830_s5  ;;  %p1838_p12 = scmp.lt.s32.totalorder %s171_s27, %s171_s27 }
  0x14   : > { %p2117_p7 = pnand %p1710_p6, %p57_p1  ;;  %p1839_p13 = scmp.lt.s32.totalorder %s1830_s5, %s1830_s5 }
  0x16   : > { %p1821_p8 = pneg %p2117_p7  ;;  %p1840_p0 = por %p1839_p13, %p1838_p12 }
  0x18   : > { %p1833_p10 = pnand %p1831_p9, %p1821_p8 }
  0x1a   : > { %p1834_p11 = pneg %p1833_p10 }
  0x1c   : > { %p1841_p2 = pnand %p1840_p0, %p1834_p11 }
  0x1e   : > { %1844 = shalt.err (!%p1841_p2)
}
  0x1f   : > { %s2408_s6 = smov 128   ;;  %s2410_s7 = smov 8  }
  0x20   : > { %s2420_s2 = sld [smem:[#allocation19_spill]]  ;;  %s1856_s10 = scalar_lea.vmem %s184_s30, 256 }
  0x21   : > { %p1857_p3 = scmp.ne.s32.totalorder %s184_s30, %s1856_s10  ;;  %p1864_p10 = scmp.lt.s32.totalorder %s184_s30, %s184_s30 }
  0x22   : > { %p1865_p11 = scmp.lt.s32.totalorder %s1856_s10, %s1856_s10 }
  0x23   : > { %p1859_p6 = pnand %p1857_p3, %p1821_p8 }
  0x24   : > { %p1866_p12 = por %p1865_p11, %p1864_p10 }
  0x25   : > { %p1860_p9 = pneg %p1859_p6 }
  0x26   : > { %1713 = dma.hbm_to_vmem [thread:$0]  (!%p2117_p7), %s2420_s2, 256, %s171_s27, [#allocation7], %s2408_s6, %s2408_s6, %s2410_s7  }
  0x27   : > { %p1867_p13 = pnand %p1866_p12, %p1860_p9 }
  0x29   : > { %1870 = shalt.err (!%p1867_p13)
}
  0x2a   : > { %s2421_s3 = sld [smem:[#allocation20_spill]]  ;;  %s31_s13 = sadd.s32 1, %s2011_s20 }
  0x2b   : > { %s34_s14 = sadd.s32 1, %s2015_s21  ;;  %p32_p8 = scmp.ge.s32.totalorder %s31_s13, 4 }
  0x2c   : > { %s43_s15 = sadd.s32 1, %s1999_s17  ;;  %p50_p0 = scmp.ne.s32.totalorder %s1999_s17, %s1995_s16 }
  0x2d   : > { %p51_p2 = scmp.eq.s32.totalorder %s2019_s22, 0  ;;  %s2436_s13 = smov (%p32_p8, %s31_s13), 0 }
  0x2e   : > { %2422 = sst [smem:[#allocation18_spill]] %s2436_s13  ;;  %s2438_s14 = smov (!%p32_p8, %s34_s14), %s2015_s21 }
  0x2f   : > { %s39_s26 = ssub.s32 %s2011_s20, %s2436_s13  ;;  %p2156_p3 = por %p51_p2, %p50_p0 }
  0x30   : > { %1716 = dma.hbm_to_vmem [thread:$0]  (!%p2117_p7), %s2421_s3, 256, %s184_s30, [#allocation10], %s2408_s6, %s2408_s6, %s2410_s7  }
  0x31   : > { %p36_p6 = scmp.ge.s32.totalorder %s2438_s14, 2  ;;  %p1726_p7 = scmp.lt.s32.totalorder %s2019_s22, 8 }
  0x32   : > { %s197_s28 = sand.u32 1, %s1999_s17   ;;  %s1525_s29 = sshll.u32 %s2011_s20, 1 }
  0x33   : > { %s2440_s14 = smov (%p36_p6, %s2438_s14), 0  ;;  %s1524_s30 = sshll.u32 %s197_s28, 4 }
  0x34   : > { %s38_s5 = ssub.s32 %s2015_s21, %s2440_s14  ;;  %s1526_s9 = sshll.u32 %s2015_s21, 3 }
  0x35   : > { %s40_s8 = sor.u32 %s39_s26, %s38_s5  ;;  %s207_s10 = sadd.s32 %s1526_s9, %s1525_s29 }
  0x36   : > { %p41_p9 = scmp.eq.s32.totalorder %s40_s8, 0  ;;  %s1527_s11 = sshll.u32 %s207_s10, 7 }
  0x37   : > { %s201_s12 = scalar_lea.vmem [#allocation3], %s1524_s30  ;;  %s209_s13 = scalar_lea.hbm %s2403_s0, %s1527_s11 }
  0x38   : > { %s210_s6 = sshll.u32 %s201_s12, 4  ;;  %p2178_p10 = pnand %p1726_p7, %p2156_p3  ;;  %s211_s6 = int_to_ptr.vmem [resolvable:$true] %s210_s6 }
  0x39   : > { %s2169_s7 = scalar_select %p41_p9, %s1999_s17, %s43_s15  }
  0x3a   : > { %s2185_s29 = scalar_lea.hbm %s2404_s1, %s1527_s11  ;;  %s224_s15 = scalar_lea.vmem [#allocation6], %s1524_s30 }
  0x3b   : > { %s233_s8 = sshll.u32 %s224_s15, 4  ;;  %s198_s2 = scalar_lea.sflag [#allocation4], %s197_s28  ;;  %s2187_s8 = int_to_ptr.vmem [resolvable:$true] %s233_s8 }
  0x3c   : > { %p1873_p11 = pneg %p2178_p10  ;;  %s1884_s3 = scalar_lea.vmem %s211_s6, 256 }
  0x3d   : > { %p1885_p12 = scmp.ne.s32.totalorder %s211_s6, %s1884_s3  ;;  %s2025_s27 = smov [#allocation3]  }
  0x3e   : > { %s1889_s9 = sshll.u32 %s2025_s27, 4  ;;  %s1890_s9 = int_to_ptr.vmem [resolvable:$false] %s1889_s9 }
  0x3f   : > { %p1887_p13 = pnand %p1885_p12, %p1873_p11  ;;  %s1891_s10 = scalar_lea.vmem %s1890_s9, 512 }
  0x40   : > { %p1892_p0 = scmp.lt.s32.totalorder %s211_s6, %s1890_s9  ;;  %p1893_p2 = scmp.lt.s32.totalorder %s1891_s10, %s1884_s3 }
  0x41   : > { %p1888_p8 = pneg %p1887_p13 }
  0x42   : > { %p1894_p3 = por %p1893_p2, %p1892_p0 }
  0x44   : > { %p1895_p6 = pnand %p1894_p3, %p1888_p8 }
  0x46   : > { %1898 = shalt.err (!%p1895_p6)
}
  0x47   : > { %s2425_s28 = smov 8   ;;  %s2426_s30 = smov 128  }
  0x48   : > { %1720 = dma.hbm_to_vmem [thread:$0]  (!%p2178_p10), %s209_s13, 256, %s211_s6, %s198_s2, %s2426_s30, %s2426_s30, %s2425_s28  }
  0x49   : > { %s220_s11 = sand.u32 1, %s2019_s22   ;;  %s1912_s26 = scalar_lea.vmem %s2187_s8, 256 }
  0x4a   : > { %s221_s12 = scalar_lea.sflag [#allocation7], %s220_s11  ;;  %p1913_p7 = scmp.ne.s32.totalorder %s2187_s8, %s1912_s26 }
  0x4b   : > { %s2026_s5 = smov [#allocation6]  }
  0x4c   : > { %p1915_p9 = pnand %p1913_p7, %p1873_p11  ;;  %s1917_s15 = sshll.u32 %s2026_s5, 4  ;;  %s1918_s15 = int_to_ptr.vmem [resolvable:$false] %s1917_s15 }
  0x4d   : > { %s1919_s3 = scalar_lea.vmem %s1918_s15, 512  ;;  %p1920_p13 = scmp.lt.s32.totalorder %s2187_s8, %s1918_s15 }
  0x4e   : > { %p1916_p12 = pneg %p1915_p9  ;;  %p1921_p8 = scmp.lt.s32.totalorder %s1919_s3, %s1912_s26 }
  0x50   : > { %p1922_p0 = por %p1921_p8, %p1920_p13 }
  0x52   : > { %p1923_p2 = pnand %p1922_p0, %p1916_p12 }
  0x54   : > { %1926 = shalt.err (!%p1923_p2)
}
  0x55   : > { %1723 = dma.hbm_to_vmem [thread:$0]  (!%p2178_p10), %s2185_s29, 256, %s2187_s8, %s221_s12, %s2426_s30, %s2426_s30, %s2425_s28  }
  0x56   : > { %245 = sbr.rel (%p2109_p5) target bundleno = 851 (0x353), region = 36  ;;  %s247_s6 = sand.u32 (!%p2109_p5), 1, %s1995_s16  }
  0x57   : > { %s2216_s13 = sshll.u32 (!%p2109_p5), %s247_s6, 4  ;;  %s248_s2 = scalar_lea.sflag (!%p2109_p5), [#allocation4], %s247_s6 }
  0x58   : > { %s251_s27 = scalar_lea.vmem (!%p2109_p5), [#allocation3], %s2216_s13 }
  0x5b   : > { %1970 = dma.done.wait (%p2105_p4), %s248_s2, 256  }
  0x5c   : > { %1972 = vsyncadd (%p2105_p4), %s248_s2, 4294967040  ;;  %s256_s20 = sand.u32 1, %s2097_s23   ;;  %s260_s25 = scalar_lea.vmem [#allocation6], %s2216_s13 }
  0x5d   : > { %s257_s29 = scalar_lea.sflag [#allocation7], %s256_s20 }
  0x5e   : > { %1974 = dma.done.wait (%p2105_p4), %s257_s29, 256  }
  0x5f   : > { %1976 = vsyncadd (%p2105_p4), %s257_s29, 4294967040 }
  0x60   : > { %1978 = dma.done.wait (%p57_p1), [#allocation7], 256  }
  0x61   : > { %1980 = vsyncadd (%p57_p1), [#allocation7], 4294967040 }
  0x62   : > { %1982 = dma.done.wait (%p57_p1), [#allocation10], 256  }
  0x63   : > { %1984 = vsyncadd (%p57_p1), [#allocation10], 4294967040  ;;  %p293_p5 = scmp.eq.s32.totalorder %s2007_s19, 0  ;;  %p294_p10 = scmp.eq.s32.totalorder %s2003_s18, 0 }
  0x65   : > { %p295_p11 = pnand %p294_p10, %p293_p5 }
  0x67   : > { %298 = sbr.rel (%p295_p11) target bundleno = 110 (0x6e), region = 56 }
  0x6c   : > { %vm299_vm0 = vcmask 130048   ;;  %v2027_v0 = vmov 0.0  }
  0x6d   : > { %300 = vst.msk [vmem:[#allocation2] sm:$0xff] %vm299_vm0, %v2027_v0 }
  0x6e PF: > { %v2239_v1 = vld [vmem:[%s251_s27 + $0x8] sm:$0xff]  ;;  %v2241_v2 = vld [vmem:[%s251_s27] sm:$0xff]  ;;  %vm309_vm1 = vcmask 130048   ;;  %s2028_s24 = smov 16   ;;  %s2029_s8 = smov 1   ;;  %v1163_v15 = vlaneseq  ;;  %vm1168_vm2 = vcmask 1047680  }
  0x6f   : > { %v305_v3 = vld [vmem:[#allocation8] sm:$0xff]  ;;  %1604 = vmatprep.subr.mxu0 %v2239_v1  ;;  %v306_v4 = vld [vmem:[#allocation8 + $0x8] sm:$0x3]  ;;  %1169 = vrot.lane.b32.xlu0 %v2241_v2, %s2028_s24  ;;  %v629_v7 = vmul.f32 %v2239_v1, %v2239_v1  ;;  %v628_v8 = vmul.f32 %v2241_v2, %v2241_v2  ;;  %v308_v13 = vld [vmem:[#allocation9 + $0x8] sm:$0xff]  ;;  %v2030_v25 = vmov 0.0   ;;  %vm1280_vm4 = vcmask 138248  }
  0x70   : > { %1608 = vmatprep.mubr.msk.f32.mxu0 %vm309_vm1, %v305_v3  ;;  %1605 = vmatpush3.msra.mxu0 %v2239_v1  ;;  %v2246_v5 = vld [vmem:[%s260_s25 + $0x8] sm:$0xff]  ;;  %v2249_v6 = vld [vmem:[%s260_s25] sm:$0xff]  ;;  %v1164_v17 = vand.u32 127, %v1163_v15  ;;  %s2031_s9 = smov 127   ;;  %p1342_p1 = scmp.eq.s32.totalorder %s2007_s19, 1  ;;  %vm1142_vm5 = vcmask 1040384  }
  0x71   : > { %1606 = vmatprep.subr.mxu0 %v2241_v2  ;;  %1197 = vrot.lane.b32.xlu1 %v2249_v6, %s2028_s24  ;;  %v787_v9 = vmul.f32 %v2246_v5, %v2246_v5  ;;  %v786_v10 = vmul.f32 %v2249_v6, %v2249_v6  ;;  %v945_v11 = vmul.f32 %v2246_v5, %v2239_v1  ;;  %v307_v14 = vld [vmem:[#allocation9] sm:$0xff]  ;;  %p1343_p4 = scmp.eq.s32.totalorder %s2003_s18, 3  ;;  %vm1248_vm6 = vcmask 1046528  }
  0x72   : > { %1607 = vmatpush3.msra.mxu0 %v2241_v2  ;;  %v944_v12 = vmul.f32 %v2249_v6, %v2241_v2  ;;  %1611 = vmatprep.subr.mxu1 %v308_v13  ;;  %vm1165_vm3 = vcmp.lt.s32.totalorder %v1164_v17, 15  ;;  %vm1222_vm7 = vcmp.gt.f32.partialorder %v2246_v5, 0.0  ;;  %vm1255_vm8 = vcmask 129024  }
  0x73   : > { %1609 = vmatmul.mubr.msk.f32.vlgmr.msra.gmra.mxu0 %vm309_vm1, %v306_v4  ;;  %1618 = vmatprep.subr.mxu0 %v2246_v5  ;;  %v1557_v26 = vsel %vm1165_vm3, 1.0, %v2030_v25  ;;  %p2331_p3 = pnand %p1343_p4, %p1342_p1  ;;  %vm1221_vm9 = vcmp.gt.f32.partialorder %v2249_v6, 0.0  ;;  %vm1235_vm10 = vcmask 74752   ;;  %vm1233_vm11 = vcmask 80896  }
  0x74   : > { %1619 = vmatpush3.msra.mxu0 %v2246_v5  ;;  %1622 = vmatprep.mubr.msk.f32.mxu0 %vm309_vm1, %v305_v3  ;;  %vm1329_vm12 = vcmask 1041408   ;;  %vm1331_vm13 = vcmask 1042432   ;;  %vm1333_vm14 = vcmask 1043456   ;;  %vm1335_vm15 = vcmask 1044480  }
  0x75   : > { %1620 = vmatprep.subr.mxu0 %v2249_v6  ;;  %1172 = vrot.lane.b32.xlu0 %v2239_v1, %s2028_s24  ;;  %vm1337_vm0 = vcmask 1045504  }
  0x76   : > { %1621 = vmatpush3.msra.mxu0 %v2249_v6  ;;  %1200 = vrot.lane.b32.xlu1 %v2246_v5, %s2028_s24 }
  0x77   : > { %1623 = vmatmul.mubr.msk.f32.vlgmr.msra.gmra.mxu0 %vm309_vm1, %v306_v4  ;;  %1632 = vmatprep.subr.mxu0 %v629_v7 }
  0x78   : > { %1633 = vmatpush3.msra.mxu0 %v629_v7  ;;  %1636 = vmatprep.mubr.msk.f32.mxu0 %vm309_vm1, %v305_v3 }
  0x79   : > { %1634 = vmatprep.subr.mxu0 %v628_v8  ;;  %1181 = vrot.lane.b32.xlu0 %v2241_v2, %s2029_s8 }
  0x7a   : > { %1635 = vmatpush3.msra.mxu0 %v628_v8  ;;  %1183 = vrot.lane.b32.xlu1 %v2239_v1, %s2029_s8 }
  0x7b   : > { %1637 = vmatmul.mubr.msk.f32.vlgmr.msra.gmra.mxu0 %vm309_vm1, %v306_v4  ;;  %1646 = vmatprep.subr.mxu0 %v787_v9 }
  0x7c   : > { %1647 = vmatpush3.msra.mxu0 %v787_v9  ;;  %1650 = vmatprep.mubr.msk.f32.mxu0 %vm309_vm1, %v305_v3 }
  0x7d   : > { %1648 = vmatprep.subr.mxu0 %v786_v10  ;;  %1209 = vrot.lane.b32.xlu0 %v2249_v6, %s2029_s8 }
  0x7e   : > { %1649 = vmatpush3.msra.mxu0 %v786_v10  ;;  %1612 = vmatpush3.msra.mxu1 %v308_v13 }
  0x7f   : > { %1651 = vmatmul.mubr.msk.f32.vlgmr.msra.gmra.mxu0 %vm309_vm1, %v306_v4  ;;  %1660 = vmatprep.subr.mxu0 %v945_v11 }
  0x80   : > { %1661 = vmatpush3.msra.mxu0 %v945_v11  ;;  %1664 = vmatprep.mubr.msk.f32.mxu0 %vm309_vm1, %v305_v3 }
  0x81   : > { %1662 = vmatprep.subr.mxu0 %v944_v12  ;;  %1613 = vmatprep.subr.mxu1 %v307_v14 }
  0x82   : > { %1663 = vmatpush3.msra.mxu0 %v944_v12  ;;  %1614 = vmatpush3.msra.mxu1 %v307_v14 }
  0x83   : > { %1665 = vmatmul.mubr.msk.f32.vlgmr.msra.gmra.mxu0 %vm309_vm1, %v306_v4  ;;  %1625 = vmatprep.subr.mxu1 %v308_v13 }
  0xe1   : > { %v1170_v16 = vpop.permute.xlu0 %1169 }
  0xe2   : > { %v1171_v19 = vsel %vm1168_vm2, %v1170_v16, %v2241_v2 }
  0xe3   : > { %v1198_v18 = vpop.permute.xlu1 %1197  ;;  %1175 = vrot.lane.b32.xlu0 %v1171_v19, %s2028_s24 }
  0xe4   : > { %v1199_v20 = vsel %vm1168_vm2, %v1198_v18, %v2249_v6 }
  0xe7   : > { %v1173_v21 = vpop.permute.xlu0 %1172  ;;  %1203 = vrot.lane.b32.xlu0 %v1199_v20, %s2028_s24  ;;  %v1154_v20 = vrot.slane %v2249_v6, 7 }
  0xe8   : > { %v1174_v22 = vsel %vm1168_vm2, %v1173_v21, %v2239_v1  ;;  %v1201_v23 = vpop.permute.xlu1 %1200  ;;  %v1155_v21 = vrot.slane %v2246_v5, 7 }
  0xe9   : > { %1177 = vrot.lane.b32.xlu1 %v1174_v22, %s2028_s24  ;;  %v1202_v24 = vsel %vm1168_vm2, %v1201_v23, %v2246_v5  ;;  %v1144_v22 = vrot.slane %v2239_v1, 7  ;;  %v1143_v23 = vrot.slane %v2241_v2, 7 }
  0xeb   : > { %1192 = vrot.lane.b32.xlu0 %v1557_v26, %s2029_s8  ;;  %v1182_v37 = vpop.permute.xlu0 %1181  ;;  %v1145_v26 = vsel %vm1142_vm5, %v1143_v23, %v1144_v22 }
  0xec   : > { %v1184_v39 = vpop.permute.xlu1 %1183 }
  0xed   : > { %1205 = vrot.lane.b32.xlu1 %v1202_v24, %s2028_s24  ;;  %v1156_v24 = vsel %vm1142_vm5, %v1154_v20, %v1155_v21 }
  0xef   : > { %v1210_v38 = vpop.permute.xlu0 %1209 }
  0xf1   : > { %1211 = vrot.lane.b32.xlu1 %v2246_v5, %s2029_s8 }
 0x133   : > { %v1610_v27 = vpop.f32.mrf.mxu0 }
 0x135   : > { %v382_v28 = vpop.f32.mrf.mxu0 }
 0x136   : > { %1615 = vmatprep.mubr.msk.f32.mxu1 %vm309_vm1, %v382_v28  ;;  %v1160_v28 = vsub.f32 %v2246_v5, %v1156_v24 }
 0x137   : > { %1616 = vmatmul.mubr.msk.f32.vlgmr.msra.gmra.mxu1 %vm309_vm1, %v1610_v27  ;;  %v1624_v29 = vpop.f32.mrf.mxu0  ;;  %v1159_v27 = vsub.f32 %v2249_v6, %v1154_v20 }
 0x138   : > { %1626 = vmatpush3.msra.mxu1 %v308_v13 }
 0x139   : > { %v538_v30 = vpop.f32.mrf.mxu0  ;;  %1627 = vmatprep.subr.mxu1 %v307_v14 }
 0x13a   : > { %1628 = vmatpush3.msra.mxu1 %v307_v14  ;;  %1629 = vmatprep.mubr.msk.f32.mxu1 %vm309_vm1, %v538_v30  ;;  %v1149_v30 = vsub.f32 %v2239_v1, %v1145_v26 }
 0x13b   : > { %1630 = vmatmul.mubr.msk.f32.vlgmr.msra.gmra.mxu1 %vm309_vm1, %v1624_v29  ;;  %v1638_v31 = vpop.f32.mrf.mxu0  ;;  %1639 = vmatprep.subr.mxu1 %v308_v13  ;;  %v1148_v29 = vsub.f32 %v2241_v2, %v1143_v23 }
 0x13c   : > { %1640 = vmatpush3.msra.mxu1 %v308_v13 }
 0x13d   : > { %v696_v32 = vpop.f32.mrf.mxu0  ;;  %1641 = vmatprep.subr.mxu1 %v307_v14 }
 0x13e   : > { %1642 = vmatpush3.msra.mxu1 %v307_v14  ;;  %1643 = vmatprep.mubr.msk.f32.mxu1 %vm309_vm1, %v696_v32  ;;  %v1161_v32 = vand.u32 2147483647, %v1159_v27 }
 0x13f   : > { %1644 = vmatmul.mubr.msk.f32.vlgmr.msra.gmra.mxu1 %vm309_vm1, %v1638_v31  ;;  %v1652_v33 = vpop.f32.mrf.mxu0  ;;  %1653 = vmatprep.subr.mxu1 %v308_v13 }
 0x140   : > { %1654 = vmatpush3.msra.mxu1 %v308_v13 }
 0x141   : > { %v854_v34 = vpop.f32.mrf.mxu0  ;;  %1655 = vmatprep.subr.mxu1 %v307_v14 }
 0x142   : > { %1656 = vmatpush3.msra.mxu1 %v307_v14  ;;  %1657 = vmatprep.mubr.msk.f32.mxu1 %vm309_vm1, %v854_v34 }
 0x143   : > { %1658 = vmatmul.mubr.msk.f32.vlgmr.msra.gmra.mxu1 %vm309_vm1, %v1652_v33  ;;  %v1666_v35 = vpop.f32.mrf.mxu0  ;;  %1667 = vmatprep.subr.mxu1 %v308_v13  ;;  %v1162_v33 = vand.u32 2147483647, %v1160_v28 }
 0x144   : > { %1668 = vmatpush3.msra.mxu1 %v308_v13 }
 0x145   : > { %v1012_v36 = vpop.f32.mrf.mxu0  ;;  %1669 = vmatprep.subr.mxu1 %v307_v14 }
 0x146   : > { %1670 = vmatpush3.msra.mxu1 %v307_v14  ;;  %1671 = vmatprep.mubr.msk.f32.mxu1 %vm309_vm1, %v1012_v36  ;;  %v1151_v36 = vand.u32 2147483647, %v1149_v30 }
 0x147   : > { %1672 = vmatmul.mubr.msk.f32.vlgmr.msra.gmra.mxu1 %vm309_vm1, %v1666_v35  ;;  %v1150_v35 = vand.u32 2147483647, %v1148_v29 }
 0x155   : > { %v1176_v40 = vpop.permute.xlu0 %1175 }
 0x156   : > { %v1179_v41 = vsel %vm1168_vm2, %v1176_v40, %v2241_v2  ;;  %v1267_v40 = vrot.slane %v1162_v33, 1 }
 0x157   : > { %v1187_v42 = vsub.f32 %v1179_v41, %v1182_v37 }
 0x159   : > { %v1204_v44 = vpop.permute.xlu0 %1203  ;;  %v1189_v46 = vand.u32 2147483647, %v1187_v42  ;;  %v1249_v42 = vrot.slane %v1150_v35, 1 }
 0x15a   : > { %v1207_v47 = vsel %vm1168_vm2, %v1204_v44, %v2249_v6  ;;  %v1228_v44 = vsub.f32 %v2246_v5, %v2239_v1 }
 0x15b   : > { %v1178_v43 = vpop.permute.xlu1 %1177  ;;  %v1215_v49 = vsub.f32 %v1207_v47, %v1210_v38  ;;  %v1227_v47 = vsub.f32 %v2249_v6, %v2241_v2  ;;  %v1272_v2 = vsel %vm1255_vm8, %v1267_v40, 0.0 }
 0x15c   : > { %v1180_v45 = vsel %vm1168_vm2, %v1178_v43, %v2239_v1  ;;  %v1250_v43 = vrot.slane %v1151_v36, 1  ;;  %v1559_v1 = vsel %vm1222_vm7, 1.0, %v2030_v25 }
 0x15d   : > { %v1188_v48 = vsub.f32 %v1180_v45, %v1184_v39  ;;  %v1193_v52 = vpop.permute.xlu0 %1192  ;;  %v1217_v53 = vand.u32 2147483647, %v1215_v49  ;;  %v1266_v39 = vrot.slane %v1161_v32, 1  ;;  %v1309_v24 = vsel %vm309_vm1, %v1559_v1, 0.0 }
 0x15e   : > { %v1195_v54 = vmul.f32 %v1193_v52, %v1189_v46 }
 0x15f   : > { %v1190_v50 = vand.u32 2147483647, %v1188_v48  ;;  %v1206_v51 = vpop.permute.xlu1 %1205  ;;  %v1219_v61 = vmul.f32 %v1217_v53, %v1193_v52 }
 0x160   : > { %v1208_v55 = vsel %vm1168_vm2, %v1206_v51, %v2246_v5  ;;  %v1281_v57 = vsel %vm1280_vm4, %v1195_v54, 0.0  ;;  %v1268_v51 = vsel %vm1248_vm6, %v1266_v39, %v1267_v40  ;;  %v1251_v54 = vsel %vm1248_vm6, %v1249_v42, %v1250_v43 }
 0x161   : > { %v1196_v56 = vmul.f32 %v1193_v52, %v1190_v50  ;;  %v1290_v4 = vsel %vm1280_vm4, %v1219_v61, 0.0 }
 0x163   : > { %v1212_v58 = vpop.permute.xlu1 %1211  ;;  %v1282_v59 = vsel %vm1280_vm4, %v1196_v56, 0.0  ;;  %v1229_v56 = vand.u32 2147483647, %v1227_v47 }
 0x164   : > { %v1216_v60 = vsub.f32 %v1208_v55, %v1212_v58  ;;  %v1283_v62 = vadd.f32 %v1282_v59, %v1281_v57  ;;  %v1230_v55 = vand.u32 2147483647, %v1228_v44  ;;  %v1271_v57 = vsel %vm309_vm1, %v1268_v51, 0.0 }
 0x165   : > { %v1256_v58 = vsel %vm1255_vm8, %v1250_v43, 0.0 }
 0x166   : > { %v1218_v63 = vand.u32 2147483647, %v1216_v60  ;;  %v1284_v0 = vrot.slane %v1283_v62, 4 }
 0x168   : > { %v1220_v3 = vmul.f32 %v1218_v63, %v1193_v52  ;;  %v1285_v7 = vadd.f32 %v1284_v0, %v1283_v62  ;;  %v1254_v62 = vsel %vm309_vm1, %v1251_v54, 0.0  ;;  %v1558_v63 = vsel %vm1221_vm9, 1.0, %v2030_v25 }
 0x169   : > { %v1308_v21 = vsel %vm309_vm1, %v1558_v63, 0.0 }
 0x16a   : > { %v1291_v8 = vsel %vm1280_vm4, %v1220_v3, 0.0  ;;  %v1286_v9 = vrot.slane %v1285_v7, 2  ;;  %v1310_v30 = vadd.f32 %v1309_v24, %v1308_v21  ;;  %v1245_v21 = vld [vmem:[#allocation2] sm:$0xff] }
 0x16b   : > { %v1292_v10 = vadd.f32 %v1291_v8, %v1290_v4  ;;  %v1232_v8 = vmul.f32 %v1559_v1, %v1230_v55 }
 0x16c   : > { %v1287_v11 = vadd.f32 %v1286_v9, %v1285_v7  ;;  %v1273_v9 = vadd.f32 %v1272_v2, %v1271_v57  ;;  %v1311_v42 = vrot.slane %v1310_v30, 4 }
 0x16d   : > { %v1293_v12 = vrot.slane %v1292_v10, 4  ;;  %v1300_v25 = vsel %vm309_vm1, %v1232_v8, 0.0 }
 0x16e   : > { %v1288_v13 = vrot.slane %v1287_v11, 1 }
 0x16f   : > { %v1294_v14 = vadd.f32 %v1293_v12, %v1292_v10  ;;  %v1257_v10 = vadd.f32 %v1256_v58, %v1254_v62 }
 0x170   : > { %v1289_v15 = vadd.f32 %v1288_v13, %v1287_v11  ;;  %v1231_v11 = vmul.f32 %v1558_v63, %v1229_v56 }
 0x171   : > { %v1295_v16 = vrot.slane %v1294_v14, 2 }
 0x172   : > { %1318 = vrot.lane.b32.xlu1 %v1289_v15, %s2031_s9 }
 0x173   : > { %v1296_v17 = vadd.f32 %v1295_v16, %v1294_v14  ;;  %v1274_v16 = vrot.slane %v1273_v9, 4 }
 0x175   : > { %v1297_v18 = vrot.slane %v1296_v17, 1  ;;  %v1275_v27 = vadd.f32 %v1274_v16, %v1273_v9 }
 0x177   : > { %v1298_v19 = vadd.f32 %v1297_v18, %v1296_v17  ;;  %v1258_v17 = vrot.slane %v1257_v10, 4  ;;  %v1299_v18 = vsel %vm309_vm1, %v1231_v11, 0.0  ;;  %v1276_v36 = vrot.slane %v1275_v27, 2 }
 0x178   : > { %v1301_v26 = vadd.f32 %v1300_v25, %v1299_v18 }
 0x179   : > { %1322 = vrot.lane.b32.xlu0 %v1298_v19, %s2031_s9  ;;  %v1259_v28 = vadd.f32 %v1258_v17, %v1257_v10 }
 0x17a   : > { %v1302_v35 = vrot.slane %v1301_v26, 4 }
 0x17c   : > { %v1303_v44 = vadd.f32 %v1302_v35, %v1301_v26 }
 0x17e   : > { %v1304_v57 = vrot.slane %v1303_v44, 2 }
 0x180   : > { %v1305_v63 = vadd.f32 %v1304_v57, %v1303_v44 }
 0x182   : > { %v1306_v8 = vrot.slane %v1305_v63, 1 }
 0x1eb   : > { %v1323_v11 = vpop.permute.xlu0 %1322 }
 0x1f7   : > { %v1617_v31 = vpop.f32.mrf.mxu1 }
 0x1f8   : > { %v1103_v45 = vmul.f32 %v1617_v31, %v1617_v31 }
 0x1f9   : > { %v463_v34 = vpop.f32.mrf.mxu1 }
 0x1fa   : > { %v1102_v48 = vmul.f32 %v463_v34, %v463_v34 }
 0x1fb   : > { %v1631_v37 = vpop.f32.mrf.mxu1 }
 0x1fc   : > { %v1105_v38 = vmul.f32 %v1631_v37, %v1631_v37  ;;  %v1107_v19 = vmul.f32 %v1631_v37, %v1617_v31 }
 0x1fd   : > { %v619_v41 = vpop.f32.mrf.mxu1 }
 0x1fe   : > { %v1104_v46 = vmul.f32 %v619_v41, %v619_v41  ;;  %v1131_v50 = vadd.f32 %v1105_v38, %v1103_v45  ;;  %v1106_v22 = vmul.f32 %v619_v41, %v463_v34  ;;  %v1127_v32 = vmul.f32 2.0, %v1107_v19 }
 0x1ff   : > { %v1645_v49 = vpop.f32.mrf.mxu1 }
 0x200   : > { %v1130_v52 = vadd.f32 %v1104_v46, %v1102_v48  ;;  %v1133_v59 = vadd.f32 0.0001, %v1131_v50  ;;  %v1109_v60 = vsub.f32 %v1645_v49, %v1103_v45  ;;  %v1126_v39 = vmul.f32 2.0, %v1106_v22 }
 0x201   : > { %v777_v53 = vpop.f32.mrf.mxu1  ;;  %v1129_v43 = vadd.f32 0.0001, %v1127_v32  ;;  %v1277_v45 = vadd.f32 %v1276_v36, %v1275_v27 }
 0x202   : > { %v1132_v0 = vadd.f32 0.0001, %v1130_v52  ;;  %v1108_v4 = vsub.f32 %v777_v53, %v1102_v48  ;;  %1805 = vrcp.f32 %v1133_v59  ;;  %v1128_v48 = vadd.f32 0.0001, %v1126_v39 }
 0x203   : > { %v1659_v5 = vpop.f32.mrf.mxu1  ;;  %v1312_v52 = vadd.f32 %v1311_v42, %v1310_v30  ;;  %v1278_v55 = vrot.slane %v1277_v45, 1 }
 0x204   : > { %v1111_v61 = vsub.f32 %v1659_v5, %v1105_v38  ;;  %1807 = vrcp.f32 %v1132_v0  ;;  %v1260_v38 = vrot.slane %v1259_v28, 2 }
 0x205   : > { %v935_v3 = vpop.f32.mrf.mxu1  ;;  %v1313_v59 = vrot.slane %v1312_v52, 2 }
 0x206   : > { %v1119_v6 = vadd.f32 %v1111_v61, %v1109_v60  ;;  %v1110_v7 = vsub.f32 %v935_v3, %v1104_v46  ;;  %v1261_v46 = vadd.f32 %v1260_v38, %v1259_v28  ;;  %v1279_v61 = vadd.f32 %v1278_v55, %v1277_v45 }
 0x207   : > { %v1673_v14 = vpop.f32.mrf.mxu1  ;;  %v1314_v3 = vadd.f32 %v1313_v59, %v1312_v52 }
 0x208   : > { %v1121_v12 = vadd.f32 0.0009, %v1119_v6  ;;  %v1118_v13 = vadd.f32 %v1110_v7, %v1108_v4  ;;  %v1113_v23 = vsub.f32 %v1673_v14, %v1107_v19  ;;  %v1262_v56 = vrot.slane %v1261_v46, 1  ;;  %v1319_v6 = vpop.permute.xlu1 %1318 }
 0x209   : > { %v1093_v20 = vpop.f32.mrf.mxu1  ;;  %v1307_v14 = vadd.f32 %v1306_v8, %v1305_v63 }
 0x20a   : > { %1809 = vrcp.f32 %v1121_v12  ;;  %v1120_v15 = vadd.f32 0.0009, %v1118_v13  ;;  %v1112_v29 = vsub.f32 %v1093_v20, %v1106_v22  ;;  %v1115_v33 = vmul.f32 2.0, %v1113_v23 }
 0x20b   : > { %v1263_v62 = vadd.f32 %v1262_v56, %v1261_v46  ;;  %v1315_v13 = vrot.slane %v1314_v3, 1 }
 0x20c   : > { %1811 = vrcp.f32 %v1120_v15  ;;  %v1114_v31 = vmul.f32 2.0, %v1112_v29  ;;  %v1117_v34 = vadd.f32 0.0009, %v1115_v33 }
 0x20d   : > { %v1328_v7 = vsel %vm1142_vm5, %v1263_v62, %v1279_v61  ;;  %v1316_v25 = vadd.f32 %v1315_v13, %v1314_v3 }
 0x20e   : > { %v1116_v50 = vadd.f32 0.0009, %v1114_v31  ;;  %v1330_v10 = vsel %vm1329_vm12, %v1328_v7, %v1319_v6 }
 0x20f   : > { %v1806_v37 = vpop.eup %1805  ;;  %v1332_v16 = vsel %vm1331_vm13, %v1330_v10, %v1323_v11 }
 0x210   : > { %v1137_v47 = vmul.f32 %v1806_v37, %v1129_v43  ;;  %v1334_v18 = vsel %vm1333_vm14, %v1332_v16, %v1307_v14 }
 0x211   : > { %v1808_v40 = vpop.eup %1807  ;;  %v1336_v22 = vsel %vm1335_vm15, %v1334_v18, %v1316_v25 }
 0x212   : > { %v1135_v53 = vmul.f32 %v1808_v40, %v1128_v48 }
 0x217   : > { %v1810_v41 = vpop.eup %1809 }
 0x218   : > { %v1125_v49 = vmul.f32 %v1810_v41, %v1117_v34 }
 0x219   : > { %v1812_v51 = vpop.eup %1811 }
 0x21a   : > { %v1139_v54 = vmul.f32 %v1137_v47, %v1125_v49  ;;  %v1123_v1 = vmul.f32 %v1812_v51, %v1116_v50 }
 0x21c   : > { %v1138_v5 = vmul.f32 %v1135_v53, %v1123_v1  ;;  %v1236_v2 = vsel %vm1235_vm10, %v1139_v54, 0.0 }
 0x21e   : > { %v1234_v58 = vsel %vm1233_vm11, %v1138_v5, 0.0 }
 0x21f   : > { %v1237_v60 = vadd.f32 %v1236_v2, %v1234_v58 }
 0x221   : > { %v1238_v0 = vrot.slane %v1237_v60, 4 }
 0x223   : > { %v1239_v4 = vadd.f32 %v1238_v0, %v1237_v60 }
 0x225   : > { %v1240_v9 = vrot.slane %v1239_v4, 2 }
 0x227   : > { %v1241_v12 = vadd.f32 %v1240_v9, %v1239_v4 }
 0x229   : > { %v1242_v15 = vrot.slane %v1241_v12, 1 }
 0x22b   : > { %v1243_v17 = vadd.f32 %v1242_v15, %v1241_v12 }
 0x22d   : > { %v1244_v19 = vsel %vm1233_vm11, %v1243_v17, 0.0 }
 0x22e   : > { %v1326_v20 = vrot.slane %v1244_v19, 2 }
 0x230   : > { %v1338_v23 = vsel %vm1337_vm0, %v1336_v22, %v1326_v20  ;;  %1347 = sbr.rel (%p2331_p3) target bundleno = 845 (0x34d), region = 60 }
 0x231   : > { %v1339_v24 = vsel %vm1248_vm6, %v1338_v23, 0.0 }
 0x232   : > { %v1340_v26 = vadd.f32 %v1339_v24, %v1245_v21 }
 0x234   : > { %1341 = vst.msk [vmem:[#allocation2] sm:$0xff] %vm309_vm1, %v1340_v26 }
 0x23b   : > { %v1348_v27 = vld [vmem:[#allocation2] sm:$0xff] }
 0x23c   : > { %v1349_v28 = vsel %vm309_vm1, %v1348_v27, 0.0 }
 0x23d   : > { %1350 = vadd.xlane.f32.xlu0 %v1349_v28 }
 0x2c6   : > { %v1351_v29 = vpop.xlane.xlu0 %1350 }
 0x2c7   : > { %1674 = vpush %v1351_v29  ;;  %v1355_v30 = vrot.slane %v1351_v29, 1  ;;  %v1358_v32 = vrot.slane %v1351_v29, 2  ;;  %v1361_v33 = vrot.slane %v1351_v29, 3  ;;  %v1364_v35 = vrot.slane %v1351_v29, 4 }
 0x2c8   : > { %v1367_v36 = vrot.slane %v1351_v29, 5  ;;  %v1370_v38 = vrot.slane %v1351_v29, 6 }
 0x2c9   : > { %1676 = vpush %v1355_v30 }
 0x2ca   : > { %1678 = vpush %v1358_v32 }
 0x2cb   : > { %1680 = vpush %v1361_v33 }
 0x2cc   : > { %1682 = vpush %v1364_v35 }
 0x2cd   : > { %1684 = vpush %v1367_v36 }
 0x2ce   : > { %1686 = vpush %v1370_v38 }
 0x2f8   : > { %s1675_s18 = spop %1674 }
 0x2f9   : > { %s1378_s19 = smul.f32 0.00048828125, %s1675_s18 }
 0x2fa   : > { %s2369_s28 = spop %1676 }
 0x2fb   : > { %v1379_v39 = vstv %s1378_s19  ;;  %s1679_s30 = spop %1678  ;;  %s1385_s6 = smul.f32 0.00048828125, %s2369_s28 }
 0x2fc   : > { %s1373_s11 = smul.f32 0.00048828125, %s1679_s30  ;;  %s1681_s12 = spop %1680  ;;  %v1380_v31 = vmul.f32 1.442695, %v1379_v39 }
 0x2fd   : > { %s2371_s26 = spop %1682  ;;  %s1383_s13 = smul.f32 0.00048828125, %s1681_s12 }
 0x2fe   : > { %v1374_v37 = vstv %s1373_s11  ;;  %s1685_s5 = spop %1684 }
 0x2ff   : > { %v1375_v40 = vmul.f32 1.442695, %v1374_v37  ;;  %v1392_v42 = vstv %s1685_s5  ;;  %s1687_s15 = spop %1686 }
 0x300   : > { %s1390_s3 = smul.f32 0.00125, %s1687_s15 }
 0x301   : > { %1813 = vpow2.f32 %v1375_v40 }
 0x302   : > { %1815 = vpow2.f32 %v1380_v31  ;;  %s1391_s2 = ssub.f32 1.0, %s1390_s3 }
 0x303   : > { %1817 = vrcp.f32 %v1392_v42 }
 0x304   : > { %s1397_s10 = smul.f32 0.3, %s1391_s2 }
 0x30e   : > { %v1814_v43 = vpop.eup %1813 }
 0x30f   : > { %v1816_v34 = vpop.eup %1815  ;;  %1688 = vpush %v1814_v43 }
 0x310   : > { %v1818_v41 = vpop.eup %1817  ;;  %1690 = vpush %v1816_v34 }
 0x311   : > { %1692 = vpush %v1818_v41 }
 0x340   : > { %s1689_s27 = spop %1688 }
 0x341   : > { %s1384_s20 = smul.f32 %s1689_s27, %s1383_s13  ;;  %s1691_s29 = spop %1690 }
 0x342   : > { %s1386_s25 = smul.f32 %s1691_s29, %s1385_s6  ;;  %s1693_s24 = spop %1692 }
 0x343   : > { %s1395_s9 = smul.f32 %s1693_s24, %s2371_s26 }
 0x344   : > { %s1387_s8 = sadd.f32 %s1386_s25, %s1384_s20 }
 0x345   : > { %s1399_s30 = smul.f32 0.4, %s1395_s9 }
 0x346   : > { %s1396_s18 = smul.f32 0.3, %s1387_s8 }
 0x348   : > { %s1398_s19 = sadd.f32 %s1397_s10, %s1396_s18 }
 0x34a   : > { %s1400_s11 = sadd.f32 %s1399_s30, %s1398_s19 }
 0x34c   : > { %1402 = sst [smem:[#allocation11]] %s1400_s11 }
 0x34d PF: > { %p1729_p6 = scmp.eq.s32.totalorder %s2097_s23, 7  ;;  %s2032_s5 = smov [#allocation11]  }
 0x34f   : > { %1707 = dma.smem_to_hbm (%p1729_p6), %s2032_s5, 16, %s2407_s4, [#allocation5]  }
 0x350   : > { %1986 = dma.done.wait (%p1729_p6), [#allocation5], 16  }
 0x351   : > { %1988 = vsyncadd (%p1729_p6), [#allocation5], 4294967280 }
 0x352   : > { %1416 = sfence }
 0x353 PF: > { %s22_s22 = sadd.s32 1, %s2019_s22   ;;  %s2428_s18 = sld [smem:[#allocation17_spill]] }
 0x354   : > { %p19_p7 = scmp.ge.s32.totalorder %s22_s22, 10   ;;  %s2429_s20 = sld [smem:[#allocation18_spill]] }
 0x355   : > { %s2430_s15 = smov %s1995_s16  ;;  %s2431_s16 = smov %s1999_s17 }
 0x356   : > { %s2432_s17 = smov %s2169_s7  ;;  %s2433_s19 = smov %s2015_s21 }
 0x357   : > { %s2434_s21 = smov %s2440_s14  ;;  %21 = sbr.rel (!%p19_p7) target bundleno = 12 (0xc), region = 103 }
 0x35c   :  { %1422 = vsyncpa [#allocation4], 1 }
 0x35d   :  { %1424 = vsyncpa [#allocation4 + $0x1], 1 }
 0x35e   :  { %1425 = vsyncpa [#allocation7], 1 }
 0x35f   :  { %1427 = vsyncpa [#allocation7 + $0x1], 1 }
 0x360   :  { %1428 = vsyncpa [#allocation10], 1 }
 0x361   :  { %1429 = vsyncpa [#allocation5], 1 }
 0x362   :  { %1431 = vsyncpa [#allocation5 + $0x1], 1 }

</bundles_post_ra>
